<compile_context>
chip_gen: v5e
topology: v5e:2x2
jax: 0.10.0
libtpu: 0.0.40
codegen_flags: <defaults>
</compile_context>

<pallas_src>
import functools

import numpy as np
import jax
import jax.numpy as jnp
from jax.experimental import pallas as pl
from jax.experimental.pallas import tpu as pltpu


def _round_up(x, m):
    return ((x + m - 1) // m) * m


def _pad2(a, rows, cols):
    return jnp.pad(a, ((0, rows - a.shape[0]), (0, cols - a.shape[1])))


def _default_num_batch_tiles():
    """v7x has 2 TensorCores per chip (shard the batch grid across them via
    dimension_semantics='parallel'); v5e/v6e have 1, where a single big tile
    avoids per-grid-step overhead."""
    try:
        dev = jax.devices()[0]
        n = getattr(dev, "num_cores", None) or getattr(dev, "core_count", None)
        if n:
            return max(1, int(n))
        kind = str(getattr(dev, "device_kind", "")).lower()
        if "v7" in kind:
            return 2
    except Exception:
        pass
    return 1


def encdec_kernel(x_ref, hot_ref,
                  we1_ref, be1_ref, we2_ref, be2_ref,
                  wd1_ref, bd1_ref, wd2_ref, bd2_ref,
                  out_ref):
    """Fused encoder -> one_hot -> concat -> decoder forward for one batch tile.

    x_ref:   (TILE_B, GIN)    caller dtype (f32/bf16), cast to bf16 in-kernel
    hot_ref: (TILE_B, 1)      int32, hot lane index = label + latent_dim
    we1/be1: (GIN, H_P) bf16, (1, H_P) f32
    we2/be2: (H_P, CAT_P) bf16, (1, CAT_P) f32   (latent lives in lanes [0, L))
    wd1/bd1: (CAT_P, H_P) bf16, (1, H_P) f32     (rows [0,L)=latent, [L,L+C)=one-hot)
    wd2/bd2: (H_P, GOUT) bf16, (1, GOUT) f32
    out_ref: (TILE_B, GOUT) f32
    """
    # f32 -> bf16 on the VPU (huge slack); avoids a padded bf16 copy of x in HBM.
    x = x_ref[...].astype(jnp.bfloat16)

    # ---- encoder layer 1: Linear + ReLU ----
    h1 = jnp.dot(x, we1_ref[...], preferred_element_type=jnp.float32) + be1_ref[...]
    h1 = jnp.maximum(h1, 0.0).astype(jnp.bfloat16)

    # ---- encoder layer 2: Linear -> latent in lanes [0, L) of the CAT slab ----
    latent = jnp.dot(h1, we2_ref[...], preferred_element_type=jnp.float32) + be2_ref[...]

    # ---- one_hot placed at lanes [L, L+C): equivalent to cat([latent, one_hot]) ----
    tb, cat_p = latent.shape
    lanes = jax.lax.broadcasted_iota(jnp.int32, (tb, cat_p), 1)
    one_hot = (lanes == hot_ref[...]).astype(jnp.float32)
    cat = (latent + one_hot).astype(jnp.bfloat16)

    # ---- decoder layer 1: single lane-dense matmul (no separate K=C pass) ----
    h2 = jnp.dot(cat, wd1_ref[...], preferred_element_type=jnp.float32) + bd1_ref[...]
    h2 = jnp.maximum(h2, 0.0).astype(jnp.bfloat16)

    # ---- decoder layer 2 ----
    out_ref[...] = (jnp.dot(h2, wd2_ref[...], preferred_element_type=jnp.float32)
                    + bd2_ref[...])


def prepare_params(params, num_classes):
    """ONE-TIME weight prep (pad + bf16 cast) — hoisted out of the call path.

    Input layout is (in_features, out_features); transpose torch nn.Linear
    weights ((out, in)) before calling this with real checkpoints.
    Returns (prepared_param_dict, latent_dim).
    """
    gin, hidden = params["we1"].shape
    latent = params["we2"].shape[1]
    gout = params["wd2"].shape[1]

    h_p = _round_up(hidden, 128)
    cat_p = _round_up(latent + num_classes, 128)

    prepped = {
        # GIN kept native (full-dim sublane axis); only the lane (H) axis padded.
        "we1": _pad2(params["we1"], gin, h_p).astype(jnp.bfloat16),
        "be1": _pad2(params["be1"], 1, h_p).astype(jnp.float32),
        "we2": _pad2(params["we2"], h_p, cat_p).astype(jnp.bfloat16),
        "be2": _pad2(params["be2"], 1, cat_p).astype(jnp.float32),
        # rows [0,latent) = latent rows, [latent, latent+num_classes) = one-hot rows
        "wd1": _pad2(params["wd1"], cat_p, h_p).astype(jnp.bfloat16),
        "bd1": _pad2(params["bd1"], 1, h_p).astype(jnp.float32),
        # GOUT kept native: output is written lane-exact, no post-slice copy.
        "wd2": _pad2(params["wd2"], h_p, gout).astype(jnp.bfloat16),
        "bd2": _pad2(params["bd2"], 1, gout).astype(jnp.float32),
    }
    return prepped, latent


@functools.partial(jax.jit, static_argnames=("latent_dim", "num_batch_tiles"))
def _encdec_forward_jit(enc_in, labels, prepped, *, latent_dim, num_batch_tiles):
    we1, be1 = prepped["we1"], prepped["be1"]
    we2, be2 = prepped["we2"], prepped["be2"]
    wd1, bd1 = prepped["wd1"], prepped["bd1"]
    wd2, bd2 = prepped["wd2"], prepped["bd2"]

    B, gin = enc_in.shape
    h_p = we1.shape[1]
    cat_p = we2.shape[1]
    gout = wd2.shape[1]

    # Batch tiling: tile_b * num_batch_tiles == B whenever B is a multiple of
    # 8*num_batch_tiles, so there are no padded rows to compute then slice off.
    tile_b = max(8, _round_up(pl.cdiv(B, num_batch_tiles), 8))
    b_p = tile_b * num_batch_tiles

    x = enc_in  # native dtype + native lane width; cast to bf16 inside kernel
    # Pre-add latent_dim: the kernel compares lane index directly.
    hot = labels.astype(jnp.int32).reshape(B, 1) + latent_dim
    if b_p != B:
        x = jnp.pad(x, ((0, b_p - B), (0, 0)))
        hot = jnp.pad(hot, ((0, b_p - B), (0, 0)), constant_values=-1)

    flops = 2 * b_p * (gin * h_p + h_p * cat_p + cat_p * h_p + h_p * gout)
    bytes_accessed = (x.size * x.dtype.itemsize + hot.size * 4
                      + sum(w.size * 2 for w in (we1, we2, wd1, wd2))
                      + sum(b.size * 4 for b in (be1, be2, bd1, bd2))
                      + b_p * gout * 4)
    cost = pl.CostEstimate(flops=flops, transcendentals=0,
                           bytes_accessed=bytes_accessed)

    out = pl.pallas_call(
        encdec_kernel,
        out_shape=jax.ShapeDtypeStruct((b_p, gout), jnp.float32),
        grid=(num_batch_tiles,),
        in_specs=[
            pl.BlockSpec((tile_b, gin), lambda i: (i, 0)),   # x: tiled, native lanes
            pl.BlockSpec((tile_b, 1), lambda i: (i, 0)),     # hot lane index
            pl.BlockSpec((gin, h_p), lambda i: (0, 0)),      # we1 (resident)
            pl.BlockSpec((1, h_p), lambda i: (0, 0)),        # be1
            pl.BlockSpec((h_p, cat_p), lambda i: (0, 0)),    # we2
            pl.BlockSpec((1, cat_p), lambda i: (0, 0)),      # be2
            pl.BlockSpec((cat_p, h_p), lambda i: (0, 0)),    # wd1
            pl.BlockSpec((1, h_p), lambda i: (0, 0)),        # bd1
            pl.BlockSpec((h_p, gout), lambda i: (0, 0)),     # wd2 (native out lanes)
            pl.BlockSpec((1, gout), lambda i: (0, 0)),       # bd2
        ],
        out_specs=pl.BlockSpec((tile_b, gout), lambda i: (i, 0)),
        compiler_params=pltpu.CompilerParams(
            dimension_semantics=("parallel",)),
        cost_estimate=cost,
    )(x, hot, we1, be1, we2, be2, wd1, bd1, wd2, bd2)

    return out if b_p == B else out[:B]


def encoder_decoder_forward(enc_in, labels, prepped, *, latent_dim,
                            num_batch_tiles=None):
    """Jitted forward. `prepped` comes from prepare_params() (called once)."""
    B = enc_in.shape[0]
    if num_batch_tiles is None:
        num_batch_tiles = _default_num_batch_tiles()
    # Guard against the grid exploding / collapsing for tiny batches.
    num_batch_tiles = max(1, min(int(num_batch_tiles), max(1, B // 8)))
    return _encdec_forward_jit(enc_in, labels, prepped,
                               latent_dim=latent_dim,
                               num_batch_tiles=num_batch_tiles)


def reference_forward(enc_in, labels, params, num_classes):
    """Pure-JAX reference mirroring the PyTorch forward at the kernel's bf16
    activation/weight precision (f32 accumulation), for tight comparison."""
    bf = lambda a: a.astype(jnp.bfloat16)
    h1 = jnp.dot(bf(enc_in), bf(params["we1"]),
                 preferred_element_type=jnp.float32) + params["be1"]
    h1 = bf(jnp.maximum(h1, 0.0))
    latent = jnp.dot(h1, bf(params["we2"]),
                     preferred_element_type=jnp.float32) + params["be2"]
    one_hot = jax.nn.one_hot(labels.astype(jnp.int32), num_classes,
                             dtype=jnp.float32)
    cat = bf(jnp.concatenate([latent, one_hot], axis=1))
    h2 = jnp.dot(cat, bf(params["wd1"]),
                 preferred_element_type=jnp.float32) + params["bd1"]
    h2 = bf(jnp.maximum(h2, 0.0))
    return jnp.dot(h2, bf(params["wd2"]),
                   preferred_element_type=jnp.float32) + params["bd2"]


def init_params(key, gin, hidden, latent_dim, num_classes, gout):
    ks = jax.random.split(key, 8)
    scale = 0.1
    return {
        "we1": scale * jax.random.normal(ks[0], (gin, hidden), jnp.float32),
        "be1": scale * jax.random.normal(ks[1], (1, hidden), jnp.float32),
        "we2": scale * jax.random.normal(ks[2], (hidden, latent_dim), jnp.float32),
        "be2": scale * jax.random.normal(ks[3], (1, latent_dim), jnp.float32),
        "wd1": scale * jax.random.normal(ks[4], (latent_dim + num_classes, hidden), jnp.float32),
        "bd1": scale * jax.random.normal(ks[5], (1, hidden), jnp.float32),
        "wd2": scale * jax.random.normal(ks[6], (hidden, gout), jnp.float32),
        "bd2": scale * jax.random.normal(ks[7], (1, gout), jnp.float32),
    }


if __name__ == "__main__":
    # Small shapes consistent with the module's forward; batch large enough
    # that the batch grid and MXU row utilization are exercised.
    B = 256          # batch (cells)
    GIN = 32         # input genes
    HIDDEN = 64      # MLP hidden width
    LATENT = 16      # latent dim
    NUM_CLASSES = 4  # label classes
    GOUT = 32        # output genes

    key = jax.random.PRNGKey(0)
    k_x, k_lab, k_p = jax.random.split(key, 3)

    enc_in = jax.random.normal(k_x, (B, GIN), jnp.float32)
    labels = jax.random.randint(k_lab, (B,), 0, NUM_CLASSES, jnp.int32)
    params = init_params(k_p, GIN, HIDDEN, LATENT, NUM_CLASSES, GOUT)

    # One-time weight prep (pad + bf16 cast) — not on the per-call path.
    prepped, latent_dim = prepare_params(params, NUM_CLASSES)

    dec_out = encoder_decoder_forward(enc_in, labels, prepped,
                                      latent_dim=latent_dim)
    dec_out = jax.block_until_ready(dec_out)

    ref_out = jax.block_until_ready(
        reference_forward(enc_in, labels, params, NUM_CLASSES))

    if not np.allclose(np.asarray(dec_out), np.asarray(ref_out),
                       rtol=1e-2, atol=1e-2):
        max_err = float(np.max(np.abs(np.asarray(dec_out) - np.asarray(ref_out))))
        raise AssertionError(f"Pallas kernel output mismatch vs reference "
                             f"(max abs err {max_err:.3e})")

    print("KERNEL_OK")
</pallas_src>

<mosaic_0001>
module attributes {stable_mosaic.version = 11 : i64} {
  func.func @encdec_kernel(%arg0: i32, %arg1: memref<256x32xf32, #tpu.memory_space<vmem>>, %arg2: memref<256x1xi32, #tpu.memory_space<vmem>>, %arg3: memref<32x128xbf16, #tpu.memory_space<vmem>>, %arg4: memref<1x128xf32, #tpu.memory_space<vmem>>, %arg5: memref<128x128xbf16, #tpu.memory_space<vmem>>, %arg6: memref<1x128xf32, #tpu.memory_space<vmem>>, %arg7: memref<128x128xbf16, #tpu.memory_space<vmem>>, %arg8: memref<1x128xf32, #tpu.memory_space<vmem>>, %arg9: memref<128x32xbf16, #tpu.memory_space<vmem>>, %arg10: memref<1x32xf32, #tpu.memory_space<vmem>>, %arg11: memref<256x32xf32, #tpu.memory_space<vmem>>) attributes {dimension_semantics = [#tpu.dimension_semantics<parallel>], iteration_bounds = array<i64: 1>, scalar_prefetch = 0 : i64, scratch_operands = 0 : i64, tpu.core_type = #tpu.core_type<tc>, window_params = [{transform_indices = @transform_0, window_bounds = array<i64: 256, 32>}, {transform_indices = @transform_1, window_bounds = array<i64: 256, 1>}, {pipeline_mode = #tpu.pipeline_mode<synchronous>, transform_indices = @transform_2, window_bounds = array<i64: 32, 128>}, {pipeline_mode = #tpu.pipeline_mode<synchronous>, transform_indices = @transform_3, window_bounds = array<i64: 1, 128>}, {pipeline_mode = #tpu.pipeline_mode<synchronous>, transform_indices = @transform_4, window_bounds = array<i64: 128, 128>}, {pipeline_mode = #tpu.pipeline_mode<synchronous>, transform_indices = @transform_5, window_bounds = array<i64: 1, 128>}, {pipeline_mode = #tpu.pipeline_mode<synchronous>, transform_indices = @transform_6, window_bounds = array<i64: 128, 128>}, {pipeline_mode = #tpu.pipeline_mode<synchronous>, transform_indices = @transform_7, window_bounds = array<i64: 1, 128>}, {pipeline_mode = #tpu.pipeline_mode<synchronous>, transform_indices = @transform_8, window_bounds = array<i64: 128, 32>}, {pipeline_mode = #tpu.pipeline_mode<synchronous>, transform_indices = @transform_9, window_bounds = array<i64: 1, 32>}, {transform_indices = @transform_10, window_bounds = array<i64: 256, 32>}]} {
    %c0 = arith.constant 0 : index
    %c0_0 = arith.constant 0 : index
    %0 = vector.load %arg1[%c0, %c0_0] : memref<256x32xf32, #tpu.memory_space<vmem>>, vector<256x32xf32>
    %1 = arith.truncf %0 : vector<256x32xf32> to vector<256x32xbf16>
    %c0_1 = arith.constant 0 : index
    %c0_2 = arith.constant 0 : index
    %2 = vector.load %arg3[%c0_1, %c0_2] : memref<32x128xbf16, #tpu.memory_space<vmem>>, vector<32x128xbf16>
    %cst = arith.constant dense<0.000000e+00> : vector<256x128xf32>
    %3 = tpu.matmul %1, %2, %cst {dimension_numbers = #tpu.dot_dimension_numbers<[1], [0], [0], [1], [0, 0, 1, 1], [], []>} : vector<256x32xbf16>, vector<32x128xbf16>, vector<256x128xf32> -> vector<256x128xf32>
    %c0_3 = arith.constant 0 : index
    %c0_4 = arith.constant 0 : index
    %4 = vector.load %arg4[%c0_3, %c0_4] : memref<1x128xf32, #tpu.memory_space<vmem>>, vector<1x128xf32>
    %5 = vector.broadcast %4 : vector<1x128xf32> to vector<256x128xf32>
    %6 = arith.addf %3, %5 : vector<256x128xf32>
    %cst_5 = arith.constant 0.000000e+00 : f32
    %7 = vector.broadcast %cst_5 : f32 to vector<256x128xf32>
    %8 = arith.maximumf %6, %7 : vector<256x128xf32>
    %9 = arith.truncf %8 : vector<256x128xf32> to vector<256x128xbf16>
    %c0_6 = arith.constant 0 : index
    %c0_7 = arith.constant 0 : index
    %10 = vector.load %arg5[%c0_6, %c0_7] : memref<128x128xbf16, #tpu.memory_space<vmem>>, vector<128x128xbf16>
    %cst_8 = arith.constant dense<0.000000e+00> : vector<256x128xf32>
    %11 = tpu.matmul %9, %10, %cst_8 {dimension_numbers = #tpu.dot_dimension_numbers<[1], [0], [0], [1], [0, 0, 1, 1], [], []>} : vector<256x128xbf16>, vector<128x128xbf16>, vector<256x128xf32> -> vector<256x128xf32>
    %c0_9 = arith.constant 0 : index
    %c0_10 = arith.constant 0 : index
    %12 = vector.load %arg6[%c0_9, %c0_10] : memref<1x128xf32, #tpu.memory_space<vmem>>, vector<1x128xf32>
    %13 = vector.broadcast %12 : vector<1x128xf32> to vector<256x128xf32>
    %14 = arith.addf %11, %13 : vector<256x128xf32>
    %15 = tpu.iota {dimensions = array<i32: 1>} : vector<256x128xi32>
    %c0_11 = arith.constant 0 : index
    %c0_12 = arith.constant 0 : index
    %16 = vector.load %arg2[%c0_11, %c0_12] : memref<256x1xi32, #tpu.memory_space<vmem>>, vector<256x1xi32>
    %17 = vector.broadcast %16 : vector<256x1xi32> to vector<256x128xi32>
    %18 = arith.cmpi eq, %15, %17 : vector<256x128xi32>
    %19 = arith.extui %18 : vector<256x128xi1> to vector<256x128xi32>
    %20 = arith.sitofp %19 : vector<256x128xi32> to vector<256x128xf32>
    %21 = arith.addf %14, %20 : vector<256x128xf32>
    %22 = arith.truncf %21 : vector<256x128xf32> to vector<256x128xbf16>
    %c0_13 = arith.constant 0 : index
    %c0_14 = arith.constant 0 : index
    %23 = vector.load %arg7[%c0_13, %c0_14] : memref<128x128xbf16, #tpu.memory_space<vmem>>, vector<128x128xbf16>
    %cst_15 = arith.constant dense<0.000000e+00> : vector<256x128xf32>
    %24 = tpu.matmul %22, %23, %cst_15 {dimension_numbers = #tpu.dot_dimension_numbers<[1], [0], [0], [1], [0, 0, 1, 1], [], []>} : vector<256x128xbf16>, vector<128x128xbf16>, vector<256x128xf32> -> vector<256x128xf32>
    %c0_16 = arith.constant 0 : index
    %c0_17 = arith.constant 0 : index
    %25 = vector.load %arg8[%c0_16, %c0_17] : memref<1x128xf32, #tpu.memory_space<vmem>>, vector<1x128xf32>
    %26 = vector.broadcast %25 : vector<1x128xf32> to vector<256x128xf32>
    %27 = arith.addf %24, %26 : vector<256x128xf32>
    %cst_18 = arith.constant 0.000000e+00 : f32
    %28 = vector.broadcast %cst_18 : f32 to vector<256x128xf32>
    %29 = arith.maximumf %27, %28 : vector<256x128xf32>
    %30 = arith.truncf %29 : vector<256x128xf32> to vector<256x128xbf16>
    %c0_19 = arith.constant 0 : index
    %c0_20 = arith.constant 0 : index
    %31 = vector.load %arg9[%c0_19, %c0_20] : memref<128x32xbf16, #tpu.memory_space<vmem>>, vector<128x32xbf16>
    %cst_21 = arith.constant dense<0.000000e+00> : vector<256x32xf32>
    %32 = tpu.matmul %30, %31, %cst_21 {dimension_numbers = #tpu.dot_dimension_numbers<[1], [0], [0], [1], [0, 0, 1, 1], [], []>} : vector<256x128xbf16>, vector<128x32xbf16>, vector<256x32xf32> -> vector<256x32xf32>
    %c0_22 = arith.constant 0 : index
    %c0_23 = arith.constant 0 : index
    %33 = vector.load %arg10[%c0_22, %c0_23] : memref<1x32xf32, #tpu.memory_space<vmem>>, vector<1x32xf32>
    %34 = vector.broadcast %33 : vector<1x32xf32> to vector<256x32xf32>
    %35 = arith.addf %32, %34 : vector<256x32xf32>
    %c0_24 = arith.constant 0 : index
    %c0_25 = arith.constant 0 : index
    %36 = vector.load %arg11[%c0_24, %c0_25] : memref<256x32xf32, #tpu.memory_space<vmem>>, vector<256x32xf32>
    tpu.vector_store %arg11[%c0_24, %c0_25], %35 {strides = array<i32>} : memref<256x32xf32, #tpu.memory_space<vmem>>, vector<256x32xf32>,
    return
  }
  func.func @transform_0(%arg0: i32) -> (i32, i32) {
    %c0_i32 = arith.constant 0 : i32
    %c0_i32_0 = arith.constant 0 : i32
    return %arg0, %c0_i32 : i32, i32
  }
  func.func @transform_1(%arg0: i32) -> (i32, i32) {
    %c0_i32 = arith.constant 0 : i32
    %c0_i32_0 = arith.constant 0 : i32
    return %arg0, %c0_i32 : i32, i32
  }
  func.func @transform_2(%arg0: i32) -> (i32, i32) {
    %c0_i32 = arith.constant 0 : i32
    %c0_i32_0 = arith.constant 0 : i32
    %c0_i32_1 = arith.constant 0 : i32
    return %c0_i32, %c0_i32_0 : i32, i32
  }
  func.func @transform_3(%arg0: i32) -> (i32, i32) {
    %c0_i32 = arith.constant 0 : i32
    %c0_i32_0 = arith.constant 0 : i32
    %c0_i32_1 = arith.constant 0 : i32
    return %c0_i32, %c0_i32_0 : i32, i32
  }
  func.func @transform_4(%arg0: i32) -> (i32, i32) {
    %c0_i32 = arith.constant 0 : i32
    %c0_i32_0 = arith.constant 0 : i32
    %c0_i32_1 = arith.constant 0 : i32
    return %c0_i32, %c0_i32_0 : i32, i32
  }
  func.func @transform_5(%arg0: i32) -> (i32, i32) {
    %c0_i32 = arith.constant 0 : i32
    %c0_i32_0 = arith.constant 0 : i32
    %c0_i32_1 = arith.constant 0 : i32
    return %c0_i32, %c0_i32_0 : i32, i32
  }
  func.func @transform_6(%arg0: i32) -> (i32, i32) {
    %c0_i32 = arith.constant 0 : i32
    %c0_i32_0 = arith.constant 0 : i32
    %c0_i32_1 = arith.constant 0 : i32
    return %c0_i32, %c0_i32_0 : i32, i32
  }
  func.func @transform_7(%arg0: i32) -> (i32, i32) {
    %c0_i32 = arith.constant 0 : i32
    %c0_i32_0 = arith.constant 0 : i32
    %c0_i32_1 = arith.constant 0 : i32
    return %c0_i32, %c0_i32_0 : i32, i32
  }
  func.func @transform_8(%arg0: i32) -> (i32, i32) {
    %c0_i32 = arith.constant 0 : i32
    %c0_i32_0 = arith.constant 0 : i32
    %c0_i32_1 = arith.constant 0 : i32
    return %c0_i32, %c0_i32_0 : i32, i32
  }
  func.func @transform_9(%arg0: i32) -> (i32, i32) {
    %c0_i32 = arith.constant 0 : i32
    %c0_i32_0 = arith.constant 0 : i32
    %c0_i32_1 = arith.constant 0 : i32
    return %c0_i32, %c0_i32_0 : i32, i32
  }
  func.func @transform_10(%arg0: i32) -> (i32, i32) {
    %c0_i32 = arith.constant 0 : i32
    %c0_i32_0 = arith.constant 0 : i32
    return %arg0, %c0_i32 : i32, i32
  }
}

</mosaic_0001>

<bundles_post_ra>
// kernel: _encdec_forward_jit.1
= control target key start
LH: loop header
LB: loop body
LE: loop exit
PB: predicated region body
PF: predicated region fallthrough
CT: control target
= control target key end

     0   :  { %vm104_vm0 = vcmask 261120   ;;  %v1306_v12 = vmov 0   ;;  %s1991_s2 = inlined_call_operand.vmem [shape: bf16[32,128], index: 2, kind: input, shape index: {}]   ;;  %s1992_s0 = inlined_call_operand.vmem [shape: f32[256,32], index: 0, kind: input, shape index: {}]   ;;  %s1993_s3 = inlined_call_operand.vmem [shape: f32[1,128], index: 3, kind: input, shape index: {}]   ;;  %s1994_s1 = inlined_call_operand.vmem [shape: s32[256,1], index: 1, kind: input, shape index: {}]   ;;  %s1995_s4 = inlined_call_operand.vmem [shape: bf16[128,128], index: 4, kind: input, shape index: {}]   ;;  %s1996_s5 = inlined_call_operand.vmem [shape: f32[1,128], index: 5, kind: input, shape index: {}]   ;;  %s1997_s6 = inlined_call_operand.vmem [shape: bf16[128,128], index: 6, kind: input, shape index: {}]   ;;  %s1998_s7 = inlined_call_operand.vmem [shape: f32[1,128], index: 7, kind: input, shape index: {}]   ;;  %s1999_s8 = inlined_call_operand.vmem [shape: bf16[128,32], index: 8, kind: input, shape index: {}]   ;;  %s2000_s9 = inlined_call_operand.vmem [shape: f32[1,32], index: 9, kind: input, shape index: {}]   ;;  %s2001_s10 = inlined_call_operand.vmem [shape: f32[256,32], index: 10, kind: output, shape index: {}]  }
   0x1   :  { %v1272_v0 = vld [vmem:[%s1991_s2 + $0x8] sm:$0xff]  ;;  %v1271_v1 = vld [vmem:[%s1991_s2] sm:$0xff]  ;;  %v38_v5 = vld [vmem:[%s1992_s0 + $0x10] sm:$0xff]  ;;  %1299 = vset.pattern.permute.xlu0 %v1306_v12  ;;  %1300 = vset.pattern.permute.xlu1 %v1306_v12 }
   0x2   :  { %159 = vmatpush.bf16.msra.mxu0 %v1272_v0  ;;  %v36_v2 = vld [vmem:[%s1992_s0] sm:$0xff]  ;;  %v37_v3 = vld [vmem:[%s1992_s0 + $0x8] sm:$0xff]  ;;  %v39_v6 = vld [vmem:[%s1992_s0 + $0x18] sm:$0xff]  ;;  %1301 = vset.pattern.permute.xlu2 %v1306_v12 }
   0x3   :  { %v68_v4 = vpack.c.bf16 %v37_v3, %v36_v2  ;;  %v69_v7 = vpack.c.bf16 %v39_v6, %v38_v5  ;;  %v40_v8 = vld [vmem:[%s1992_s0 + $0x20] sm:$0xff]  ;;  %v41_v9 = vld [vmem:[%s1992_s0 + $0x28] sm:$0xff]  ;;  %v42_v14 = vld [vmem:[%s1992_s0 + $0x30] sm:$0xff] }
   0x4   :  { %v70_v10 = vpack.c.bf16 %v41_v9, %v40_v8  ;;  %v449_v11 = vld [vmem:[%s1994_s1] sm:$0xff]  ;;  %v450_v13 = vld [vmem:[%s1994_s1 + $0x8] sm:$0xff]  ;;  %v43_v15 = vld [vmem:[%s1992_s0 + $0x38] sm:$0xff] }
   0x5   :  { %482 = vperm.xlu0 %1299, %v449_v11   ;;  %v71_v16 = vpack.c.bf16 %v43_v15, %v42_v14  ;;  %v451_v17 = vld [vmem:[%s1994_s1 + $0x10] sm:$0xff]  ;;  %v452_v19 = vld [vmem:[%s1994_s1 + $0x18] sm:$0xff]  ;;  %v458_v20 = vld [vmem:[%s1994_s1 + $0x48] sm:$0xff] }
   0x6   :  { %160 = vmatpush.bf16.msra.mxu0 %v1271_v1  ;;  %v455_v18 = vld [vmem:[%s1994_s1 + $0x30] sm:$0xff]  ;;  %488 = vperm.xlu1 %1300, %v451_v17   ;;  %v44_v21 = vld [vmem:[%s1992_s0 + $0x40] sm:$0xff]  ;;  %v45_v22 = vld [vmem:[%s1992_s0 + $0x48] sm:$0xff] }
   0x7   :  { %v72_v23 = vpack.c.bf16 %v45_v22, %v44_v21  ;;  %v456_v24 = vld [vmem:[%s1994_s1 + $0x38] sm:$0xff]  ;;  %v461_v25 = vld [vmem:[%s1994_s1 + $0x60] sm:$0xff]  ;;  %v459_v27 = vld [vmem:[%s1994_s1 + $0x50] sm:$0xff] }
   0x8   :  { %v1280_v26 = vld [vmem:[%s1995_s4 + $0x38] sm:$0xff]  ;;  %v46_v29 = vld [vmem:[%s1992_s0 + $0x50] sm:$0xff]  ;;  %v462_v33 = vld [vmem:[%s1994_s1 + $0x68] sm:$0xff] }
   0x9   :  { %1127 = vmatmul.msk.bf16.vlgmr.msra.gmra.mxu0 %vm104_vm0, %v68_v4  ;;  %358 = vmatpush.bf16.msra.mxu1 %v1280_v26  ;;  %v464_v28 = vld [vmem:[%s1994_s1 + $0x78] sm:$0xff]  ;;  %v1279_v32 = vld [vmem:[%s1995_s4 + $0x30] sm:$0xff]  ;;  %v1278_v35 = vld [vmem:[%s1995_s4 + $0x28] sm:$0xff] }
   0xa   :  { %v47_v30 = vld [vmem:[%s1992_s0 + $0x58] sm:$0xff]  ;;  %v467_v34 = vld [vmem:[%s1994_s1 + $0x90] sm:$0xff]  ;;  %v1277_v36 = vld [vmem:[%s1995_s4 + $0x20] sm:$0xff] }
   0xb   :  { %v73_v31 = vpack.c.bf16 %v47_v30, %v46_v29  ;;  %v48_v37 = vld [vmem:[%s1992_s0 + $0x60] sm:$0xff]  ;;  %v49_v38 = vld [vmem:[%s1992_s0 + $0x68] sm:$0xff]  ;;  %v1276_v39 = vld [vmem:[%s1995_s4 + $0x18] sm:$0xff] }
   0xc   :  { %v74_v40 = vpack.c.bf16 %v49_v38, %v48_v37  ;;  %v465_v41 = vld [vmem:[%s1994_s1 + $0x80] sm:$0xff]  ;;  %v470_v42 = vld [vmem:[%s1994_s1 + $0xa8] sm:$0xff]  ;;  %v1275_v43 = vld [vmem:[%s1995_s4 + $0x10] sm:$0xff] }
   0xd   :  { %485 = vperm.xlu0 %1299, %v450_v13   ;;  %359 = vmatpush.bf16.msra.mxu1 %v1279_v32  ;;  %v1274_v44 = vld [vmem:[%s1995_s4 + $0x8] sm:$0xff]  ;;  %v453_v45 = vld [vmem:[%s1994_s1 + $0x20] sm:$0xff]  ;;  %v468_v46 = vld [vmem:[%s1994_s1 + $0x98] sm:$0xff] }
   0xe   :  { %491 = vperm.xlu1 %1300, %v452_v19   ;;  %v473_v47 = vld [vmem:[%s1994_s1 + $0xc0] sm:$0xff]  ;;  %494 = vperm.xlu2 %1301, %v453_v45   ;;  %v50_v49 = vld [vmem:[%s1992_s0 + $0x70] sm:$0xff]  ;;  %v51_v50 = vld [vmem:[%s1992_s0 + $0x78] sm:$0xff] }
   0xf   :  { %v1273_v48 = vld [vmem:[%s1995_s4] sm:$0xff]  ;;  %v75_v51 = vpack.c.bf16 %v51_v50, %v50_v49  ;;  %v454_v52 = vld [vmem:[%s1994_s1 + $0x28] sm:$0xff]  ;;  %v471_v53 = vld [vmem:[%s1994_s1 + $0xb0] sm:$0xff] }
  0x10   :  { %v476_v54 = vld [vmem:[%s1994_s1 + $0xd8] sm:$0xff]  ;;  %v457_v55 = vld [vmem:[%s1994_s1 + $0x40] sm:$0xff]  ;;  %v474_v56 = vld [vmem:[%s1994_s1 + $0xc8] sm:$0xff] }
  0x11   :  { %360 = vmatpush.bf16.msra.mxu1 %v1278_v35  ;;  %v479_v57 = vld [vmem:[%s1994_s1 + $0xf0] sm:$0xff]  ;;  %v52_v58 = vld [vmem:[%s1992_s0 + $0x80] sm:$0xff]  ;;  %v53_v59 = vld [vmem:[%s1992_s0 + $0x88] sm:$0xff] }
  0x12   :  { %v76_v60 = vpack.c.bf16 %v53_v59, %v52_v58  ;;  %v460_v62 = vld [vmem:[%s1994_s1 + $0x58] sm:$0xff]  ;;  %v477_v63 = vld [vmem:[%s1994_s1 + $0xe0] sm:$0xff]  ;;  %v463_v4 = vld [vmem:[%s1994_s1 + $0x70] sm:$0xff] }
  0x13   :  { %v1533_v0 = vld [vmem:[%s1993_s3] ss:$0 sm:$0xff]  ;;  %v480_v5 = vld [vmem:[%s1994_s1 + $0xf8] sm:$0xff]  ;;  %v54_v8 = vld [vmem:[%s1992_s0 + $0x90] sm:$0xff] }
  0x14   :  { %v55_v9 = vld [vmem:[%s1992_s0 + $0x98] sm:$0xff]  ;;  %v466_v13 = vld [vmem:[%s1994_s1 + $0x88] sm:$0xff]  ;;  %v469_v17 = vld [vmem:[%s1994_s1 + $0xa0] sm:$0xff] }
  0x15   :  { %500 = vperm.xlu0 %1299, %v455_v18   ;;  %361 = vmatpush.bf16.msra.mxu1 %v1277_v36  ;;  %v77_v11 = vpack.c.bf16 %v55_v9, %v54_v8  ;;  %v57_v21 = vld [vmem:[%s1992_s0 + $0xa8] sm:$0xff]  ;;  %v475_v29 = vld [vmem:[%s1994_s1 + $0xd0] sm:$0xff]  ;;  %v1285_v8 = vld [vmem:[%s1997_s6 + $0x20] sm:$0xff] }
  0x16   :  { %503 = vperm.xlu1 %1300, %v456_v24   ;;  %497 = vperm.xlu2 %1301, %v454_v52   ;;  %v58_v32 = vld [vmem:[%s1992_s0 + $0xb0] sm:$0xff]  ;;  %v478_v37 = vld [vmem:[%s1994_s1 + $0xe8] sm:$0xff] }
  0x19   :  { %1128 = vmatmul.msk.bf16.gmra.mxu0 %vm104_vm0, %v69_v7  ;;  %362 = vmatpush.bf16.msra.mxu1 %v1276_v39 }
  0x1d   :  { %509 = vperm.xlu0 %1299, %v458_v20   ;;  %363 = vmatpush.bf16.msra.mxu1 %v1275_v43  ;;  %v56_v20 = vld [vmem:[%s1992_s0 + $0xa0] sm:$0xff] }
  0x1e   :  { %512 = vperm.xlu1 %1300, %v459_v27   ;;  %506 = vperm.xlu2 %1301, %v457_v55   ;;  %v60_v43 = vld [vmem:[%s1992_s0 + $0xc0] sm:$0xff] }
  0x21   :  { %364 = vmatpush.bf16.msra.mxu1 %v1274_v44  ;;  %v61_v44 = vld [vmem:[%s1992_s0 + $0xc8] sm:$0xff] }
  0x25   :  { %518 = vperm.xlu0 %1299, %v461_v25   ;;  %365 = vmatpush.bf16.msra.mxu1 %v1273_v48  ;;  %v472_v25 = vld [vmem:[%s1994_s1 + $0xb8] sm:$0xff] }
  0x26   :  { %521 = vperm.xlu1 %1300, %v462_v33   ;;  %515 = vperm.xlu2 %1301, %v460_v62   ;;  %v59_v33 = vld [vmem:[%s1992_s0 + $0xb8] sm:$0xff] }
  0x27   :  { %v79_v35 = vpack.c.bf16 %v59_v33, %v58_v32  ;;  %v447_v33 = vlaneseq }
  0x29   :  { %1129 = vmatmul.msk.bf16.gmra.mxu0 %vm104_vm0, %v70_v10 }
  0x2d   :  { %527 = vperm.xlu0 %1299, %v464_v28  }
  0x2e   :  { %530 = vperm.xlu1 %1300, %v465_v41   ;;  %524 = vperm.xlu2 %1301, %v463_v4   ;;  %v1287_v4 = vld [vmem:[%s1997_s6 + $0x30] sm:$0xff] }
  0x35   :  { %536 = vperm.xlu0 %1299, %v467_v34  }
  0x36   :  { %539 = vperm.xlu1 %1300, %v468_v46   ;;  %533 = vperm.xlu2 %1301, %v466_v13   ;;  %v80_v46 = vpack.c.bf16 %v61_v44, %v60_v43  ;;  %v1307_v44 = vmov 0.0  }
  0x39   :  { %1130 = vmatmul.msk.bf16.gmra.mxu0 %vm104_vm0, %v71_v16 }
  0x3d   :  { %545 = vperm.xlu0 %1299, %v470_v42  }
  0x3e   :  { %548 = vperm.xlu1 %1300, %v471_v53   ;;  %542 = vperm.xlu2 %1301, %v469_v17   ;;  %v62_v53 = vld [vmem:[%s1992_s0 + $0xd0] sm:$0xff] }
  0x45   :  { %554 = vperm.xlu0 %1299, %v473_v47  }
  0x46   :  { %557 = vperm.xlu1 %1300, %v474_v56   ;;  %551 = vperm.xlu2 %1301, %v472_v25  }
  0x49   :  { %1131 = vmatmul.msk.bf16.gmra.mxu0 %vm104_vm0, %v72_v23  ;;  %v78_v23 = vpack.c.bf16 %v57_v21, %v56_v20  ;;  %v1282_v21 = vld [vmem:[%s1997_s6 + $0x8] sm:$0xff] }
  0x4d   :  { %563 = vperm.xlu0 %1299, %v476_v54   ;;  %v63_v54 = vld [vmem:[%s1992_s0 + $0xd8] sm:$0xff] }
  0x4e   :  { %566 = vperm.xlu1 %1300, %v477_v63   ;;  %560 = vperm.xlu2 %1301, %v475_v29   ;;  %v81_v56 = vpack.c.bf16 %v63_v54, %v62_v53 }
  0x55   :  { %572 = vperm.xlu0 %1299, %v479_v57  }
  0x56   :  { %575 = vperm.xlu1 %1300, %v480_v5   ;;  %569 = vperm.xlu2 %1301, %v478_v37  }
  0x59   :  { %1132 = vmatmul.msk.bf16.gmra.mxu0 %vm104_vm0, %v73_v31 }
  0x69   :  { %1133 = vmatmul.msk.bf16.gmra.mxu0 %vm104_vm0, %v74_v40 }
  0x79   :  { %1134 = vmatmul.msk.bf16.gmra.mxu0 %vm104_vm0, %v75_v51 }
  0x86   :  { %v162_v61 = vpop.f32.mrf.mxu0 }
  0x87   :  { %v163_v1 = vadd.f32 %v1533_v0, %v162_v61  ;;  %v1288_v61 = vld [vmem:[%s1997_s6 + $0x38] sm:$0xff] }
  0x88   :  { %789 = vmatpush.bf16.msra.mxu2 %v1288_v61 }
  0x89   :  { %1135 = vmatmul.msk.bf16.gmra.mxu0 %vm104_vm0, %v76_v60  ;;  %v242_v6 = vmax.f32 %v163_v1, 0.0  ;;  %v64_v1 = vld [vmem:[%s1992_s0 + $0xe0] sm:$0xff] }
  0x8c   :  { %790 = vmatpush.bf16.msra.mxu2 %v1287_v4 }
  0x8e   :  { %v164_v2 = vpop.f32.mrf.mxu0 }
  0x8f   :  { %v165_v3 = vadd.f32 %v1533_v0, %v164_v2  ;;  %v65_v2 = vld [vmem:[%s1992_s0 + $0xe8] sm:$0xff] }
  0x90   :  { %v82_v5 = vpack.c.bf16 %v65_v2, %v64_v1 }
  0x91   :  { %v243_v7 = vmax.f32 %v165_v3, 0.0 }
  0x93   :  { %v274_v10 = vpack.c.bf16 %v243_v7, %v242_v6  ;;  %v1286_v7 = vld [vmem:[%s1997_s6 + $0x28] sm:$0xff] }
  0x94   :  { %791 = vmatpush.bf16.msra.mxu2 %v1286_v7  ;;  %v495_v7 = vpop.permute.xlu2 %494 }
  0x95   :  { %366 = vmatmul.bf16.vlgmr.msra.gmra.mxu1 %v274_v10 }
  0x96   :  { %v167_v12 = vpop.f32.mrf.mxu0 }
  0x97   :  { %v168_v14 = vadd.f32 %v1533_v0, %v167_v12  ;;  %v1284_v12 = vld [vmem:[%s1997_s6 + $0x18] sm:$0xff] }
  0x98   :  { %792 = vmatpush.bf16.msra.mxu2 %v1285_v8 }
  0x99   :  { %1136 = vmatmul.msk.bf16.gmra.mxu0 %vm104_vm0, %v77_v11  ;;  %v244_v18 = vmax.f32 %v168_v14, 0.0 }
  0x9c   :  { %793 = vmatpush.bf16.msra.mxu2 %v1284_v12 }
  0x9e   :  { %v169_v15 = vpop.f32.mrf.mxu0 }
  0x9f   :  { %v170_v16 = vadd.f32 %v1533_v0, %v169_v15  ;;  %v66_v15 = vld [vmem:[%s1992_s0 + $0xf0] sm:$0xff] }
  0xa1   :  { %v245_v19 = vmax.f32 %v170_v16, 0.0  ;;  %v67_v16 = vld [vmem:[%s1992_s0 + $0xf8] sm:$0xff] }
  0xa3   :  { %v275_v22 = vpack.c.bf16 %v245_v19, %v244_v18  ;;  %v1283_v18 = vld [vmem:[%s1997_s6 + $0x10] sm:$0xff]  ;;  %v83_v19 = vpack.c.bf16 %v67_v16, %v66_v15  ;;  %v498_v16 = vpop.permute.xlu2 %497 }
  0xa4   :  { %794 = vmatpush.bf16.msra.mxu2 %v1283_v18 }
  0xa5   :  { %371 = vmatmul.bf16.gmra.mxu1 %v275_v22  ;;  %v1281_v22 = vld [vmem:[%s1997_s6] sm:$0xff] }
  0xa6   :  { %v172_v24 = vpop.f32.mrf.mxu0 }
  0xa7   :  { %v173_v26 = vadd.f32 %v1533_v0, %v172_v24 }
  0xa8   :  { %795 = vmatpush.bf16.msra.mxu2 %v1282_v21 }
  0xa9   :  { %1137 = vmatmul.msk.bf16.gmra.mxu0 %vm104_vm0, %v78_v23  ;;  %v246_v30 = vmax.f32 %v173_v26, 0.0 }
  0xac   :  { %796 = vmatpush.bf16.msra.mxu2 %v1281_v22 }
  0xae   :  { %v174_v27 = vpop.f32.mrf.mxu0 }
  0xaf   :  { %v175_v28 = vadd.f32 %v1533_v0, %v174_v27 }
  0xb1   :  { %v247_v31 = vmax.f32 %v175_v28, 0.0 }
  0xb3   :  { %v276_v34 = vpack.c.bf16 %v247_v31, %v246_v30  ;;  %v483_v31 = vpop.permute.xlu0 %482 }
  0xb5   :  { %376 = vmatmul.bf16.gmra.mxu1 %v276_v34 }
  0xb6   :  { %v177_v36 = vpop.f32.mrf.mxu0 }
  0xb7   :  { %v178_v38 = vadd.f32 %v1533_v0, %v177_v36 }
  0xb9   :  { %1138 = vmatmul.msk.bf16.gmra.mxu0 %vm104_vm0, %v79_v35  ;;  %v248_v41 = vmax.f32 %v178_v38, 0.0  ;;  %v1648_v38 = vand.u32 127, %v447_v33 }
  0xbb   :  { %vm577_vm1 = vcmp.eq.s32.totalorder %v1648_v38, %v483_v31  ;;  %vm581_vm5 = vcmp.eq.s32.totalorder %v1648_v38, %v495_v7  ;;  %vm582_vm6 = vcmp.eq.s32.totalorder %v1648_v38, %v498_v16 }
  0xbc   :  { %v1179_v18 = vsel %vm581_vm5, 1.0, %v1307_v44  ;;  %v1180_v21 = vsel %vm582_vm6, 1.0, %v1307_v44 }
  0xbe   :  { %v179_v39 = vpop.f32.mrf.mxu0 }
  0xbf   :  { %v180_v40 = vadd.f32 %v1533_v0, %v179_v39 }
  0xc1   :  { %v249_v42 = vmax.f32 %v180_v40, 0.0  ;;  %v1653_v40 = vld [vmem:[%s1996_s5] ss:$0 sm:$0xff] }
  0xc3   :  { %v277_v45 = vpack.c.bf16 %v249_v42, %v248_v41  ;;  %v486_v42 = vpop.permute.xlu0 %485 }
  0xc4   :  { %vm578_vm2 = vcmp.eq.s32.totalorder %v1648_v38, %v486_v42 }
  0xc5   :  { %381 = vmatmul.bf16.gmra.mxu1 %v277_v45  ;;  %v1175_v45 = vsel %vm577_vm1, 1.0, %v1307_v44 }
  0xc6   :  { %v182_v47 = vpop.f32.mrf.mxu0 }
  0xc7   :  { %v183_v48 = vadd.f32 %v1533_v0, %v182_v47 }
  0xc9   :  { %1139 = vmatmul.msk.bf16.gmra.mxu0 %vm104_vm0, %v80_v46  ;;  %v250_v51 = vmax.f32 %v183_v48, 0.0  ;;  %v1176_v48 = vsel %vm578_vm2, 1.0, %v1307_v44 }
  0xcb   :  { %v501_v33 = vpop.permute.xlu0 %500 }
  0xcc   :  { %vm583_vm7 = vcmp.eq.s32.totalorder %v1648_v38, %v501_v33  ;;  %v1294_v33 = vld [vmem:[%s1999_s8 + $0x28] sm:$0xff] }
  0xce   :  { %v184_v49 = vpop.f32.mrf.mxu0 }
  0xcf   :  { %v185_v50 = vadd.f32 %v1533_v0, %v184_v49 }
  0xd1   :  { %v251_v52 = vmax.f32 %v185_v50, 0.0 }
  0xd3   :  { %v278_v55 = vpack.c.bf16 %v251_v52, %v250_v51  ;;  %v489_v52 = vpop.permute.xlu1 %488 }
  0xd4   :  { %vm579_vm3 = vcmp.eq.s32.totalorder %v1648_v38, %v489_v52 }
  0xd5   :  { %386 = vmatmul.bf16.gmra.mxu1 %v278_v55 }
  0xd6   :  { %v187_v57 = vpop.f32.mrf.mxu0 }
  0xd7   :  { %v188_v58 = vadd.f32 %v1533_v0, %v187_v57 }
  0xd9   :  { %1140 = vmatmul.msk.bf16.gmra.mxu0 %vm104_vm0, %v81_v56  ;;  %v252_v62 = vmax.f32 %v188_v58, 0.0 }
  0xdb   :  { %v492_v61 = vpop.permute.xlu1 %491 }
  0xdc   :  { %vm580_vm4 = vcmp.eq.s32.totalorder %v1648_v38, %v492_v61 }
  0xde   :  { %v189_v59 = vpop.f32.mrf.mxu0 }
  0xdf   :  { %v190_v60 = vadd.f32 %v1533_v0, %v189_v59 }
  0xe1   :  { %v253_v63 = vmax.f32 %v190_v60, 0.0 }
  0xe3   :  { %v279_v3 = vpack.c.bf16 %v253_v63, %v252_v62  ;;  %v1177_v63 = vsel %vm579_vm3, 1.0, %v1307_v44 }
  0xe5   :  { %391 = vmatmul.bf16.gmra.mxu1 %v279_v3  ;;  %v1178_v3 = vsel %vm580_vm4, 1.0, %v1307_v44 }
  0xe6   :  { %v192_v6 = vpop.f32.mrf.mxu0 }
  0xe7   :  { %v193_v9 = vadd.f32 %v1533_v0, %v192_v6 }
  0xe9   :  { %1141 = vmatmul.msk.bf16.gmra.mxu0 %vm104_vm0, %v82_v5  ;;  %v254_v13 = vmax.f32 %v193_v9, 0.0 }
  0xee   :  { %v194_v10 = vpop.f32.mrf.mxu0 }
  0xef   :  { %v195_v11 = vadd.f32 %v1533_v0, %v194_v10 }
  0xf1   :  { %v255_v14 = vmax.f32 %v195_v11, 0.0 }
  0xf3   :  { %v280_v17 = vpack.c.bf16 %v255_v14, %v254_v13 }
  0xf5   :  { %396 = vmatmul.bf16.gmra.mxu1 %v280_v17 }
  0xf6   :  { %v197_v20 = vpop.f32.mrf.mxu0 }
  0xf7   :  { %v198_v23 = vadd.f32 %v1533_v0, %v197_v20 }
  0xf9   :  { %1142 = vmatmul.msk.bf16.gmra.mxu0 %vm104_vm0, %v83_v19  ;;  %v256_v26 = vmax.f32 %v198_v23, 0.0 }
  0xfe   :  { %v199_v24 = vpop.f32.mrf.mxu0 }
  0xff   :  { %v200_v25 = vadd.f32 %v1533_v0, %v199_v24 }
 0x101   :  { %v257_v27 = vmax.f32 %v200_v25, 0.0 }
 0x103   :  { %v281_v28 = vpack.c.bf16 %v257_v27, %v256_v26 }
 0x105   :  { %401 = vmatmul.bf16.gmra.mxu1 %v281_v28 }
 0x106   :  { %v202_v29 = vpop.f32.mrf.mxu0 }
 0x107   :  { %v203_v30 = vadd.f32 %v1533_v0, %v202_v29 }
 0x109   :  { %v258_v35 = vmax.f32 %v203_v30, 0.0 }
 0x10e   :  { %v204_v32 = vpop.f32.mrf.mxu0 }
 0x10f   :  { %v205_v34 = vadd.f32 %v1533_v0, %v204_v32 }
 0x111   :  { %v259_v36 = vmax.f32 %v205_v34, 0.0  ;;  %v504_v34 = vpop.permute.xlu1 %503 }
 0x112   :  { %v367_v37 = vpop.f32.mrf.mxu1  ;;  %vm584_vm8 = vcmp.eq.s32.totalorder %v1648_v38, %v504_v34 }
 0x113   :  { %v282_v39 = vpack.c.bf16 %v259_v36, %v258_v35  ;;  %v368_v43 = vadd.f32 %v1653_v40, %v367_v37 }
 0x115   :  { %406 = vmatmul.bf16.gmra.mxu1 %v282_v39  ;;  %v673_v49 = vadd.f32 %v1175_v45, %v368_v43  ;;  %v1181_v39 = vsel %vm583_vm7, 1.0, %v1307_v44 }
 0x116   :  { %v207_v41 = vpop.f32.mrf.mxu0 }
 0x117   :  { %v208_v50 = vadd.f32 %v1533_v0, %v207_v41  ;;  %v1182_v41 = vsel %vm584_vm8, 1.0, %v1307_v44 }
 0x119   :  { %v260_v56 = vmax.f32 %v208_v50, 0.0 }
 0x11a   :  { %v369_v46 = vpop.f32.mrf.mxu1 }
 0x11b   :  { %v370_v47 = vadd.f32 %v1653_v40, %v369_v46 }
 0x11d   :  { %v674_v51 = vadd.f32 %v1176_v48, %v370_v47 }
 0x11e   :  { %v209_v53 = vpop.f32.mrf.mxu0 }
 0x11f   :  { %v210_v54 = vadd.f32 %v1533_v0, %v209_v53  ;;  %v705_v55 = vpack.c.bf16 %v674_v51, %v673_v49 }
 0x121   :  { %v261_v57 = vmax.f32 %v210_v54, 0.0  ;;  %797 = vmatmul.bf16.vlgmr.msra.gmra.mxu2 %v705_v55  ;;  %v510_v54 = vpop.permute.xlu0 %509  ;;  %v507_v55 = vpop.permute.xlu2 %506 }
 0x122   :  { %v372_v58 = vpop.f32.mrf.mxu1  ;;  %vm586_vm9 = vcmp.eq.s32.totalorder %v1648_v38, %v510_v54  ;;  %vm585_vm10 = vcmp.eq.s32.totalorder %v1648_v38, %v507_v55 }
 0x123   :  { %v283_v59 = vpack.c.bf16 %v261_v57, %v260_v56  ;;  %v373_v62 = vadd.f32 %v1653_v40, %v372_v58 }
 0x125   :  { %411 = vmatmul.bf16.gmra.mxu1 %v283_v59  ;;  %v675_v4 = vadd.f32 %v1177_v63, %v373_v62  ;;  %v1184_v59 = vsel %vm586_vm9, 1.0, %v1307_v44 }
 0x126   :  { %v212_v60 = vpop.f32.mrf.mxu0 }
 0x127   :  { %v213_v5 = vadd.f32 %v1533_v0, %v212_v60  ;;  %v1183_v60 = vsel %vm585_vm10, 1.0, %v1307_v44 }
 0x129   :  { %v262_v11 = vmax.f32 %v213_v5, 0.0 }
 0x12a   :  { %v374_v1 = vpop.f32.mrf.mxu1 }
 0x12b   :  { %v375_v2 = vadd.f32 %v1653_v40, %v374_v1 }
 0x12d   :  { %v676_v6 = vadd.f32 %v1178_v3, %v375_v2 }
 0x12e   :  { %v214_v8 = vpop.f32.mrf.mxu0 }
 0x12f   :  { %v215_v9 = vadd.f32 %v1533_v0, %v214_v8  ;;  %v706_v10 = vpack.c.bf16 %v676_v6, %v675_v4 }
 0x131   :  { %v263_v12 = vmax.f32 %v215_v9, 0.0  ;;  %802 = vmatmul.bf16.gmra.mxu2 %v706_v10  ;;  %v513_v9 = vpop.permute.xlu1 %512  ;;  %v516_v10 = vpop.permute.xlu2 %515 }
 0x132   :  { %v377_v13 = vpop.f32.mrf.mxu1  ;;  %vm587_vm11 = vcmp.eq.s32.totalorder %v1648_v38, %v513_v9  ;;  %vm588_vm12 = vcmp.eq.s32.totalorder %v1648_v38, %v516_v10 }
 0x133   :  { %v284_v14 = vpack.c.bf16 %v263_v12, %v262_v11  ;;  %v378_v17 = vadd.f32 %v1653_v40, %v377_v13 }
 0x135   :  { %416 = vmatmul.bf16.gmra.mxu1 %v284_v14  ;;  %v677_v22 = vadd.f32 %v1179_v18, %v378_v17  ;;  %v1185_v14 = vsel %vm587_vm11, 1.0, %v1307_v44 }
 0x136   :  { %v217_v15 = vpop.f32.mrf.mxu0 }
 0x137   :  { %v218_v23 = vadd.f32 %v1533_v0, %v217_v15  ;;  %v1186_v15 = vsel %vm588_vm12, 1.0, %v1307_v44 }
 0x139   :  { %v264_v28 = vmax.f32 %v218_v23, 0.0  ;;  %v525_v54 = vpop.permute.xlu2 %524 }
 0x13a   :  { %v379_v19 = vpop.f32.mrf.mxu1  ;;  %vm591_vm1 = vcmp.eq.s32.totalorder %v1648_v38, %v525_v54 }
 0x13b   :  { %v380_v20 = vadd.f32 %v1653_v40, %v379_v19 }
 0x13d   :  { %v678_v24 = vadd.f32 %v1180_v21, %v380_v20 }
 0x13e   :  { %v219_v25 = vpop.f32.mrf.mxu0 }
 0x13f   :  { %v220_v26 = vadd.f32 %v1533_v0, %v219_v25  ;;  %v707_v27 = vpack.c.bf16 %v678_v24, %v677_v22  ;;  %v1296_v25 = vld [vmem:[%s1999_s8 + $0x38] sm:$0xff] }
 0x140   :  { %994 = vmatpush.bf16.msra.mxu3 %v1296_v25 }
 0x141   :  { %v265_v29 = vmax.f32 %v220_v26, 0.0  ;;  %807 = vmatmul.bf16.gmra.mxu2 %v707_v27  ;;  %v1295_v27 = vld [vmem:[%s1999_s8 + $0x30] sm:$0xff] }
 0x142   :  { %v382_v30 = vpop.f32.mrf.mxu1 }
 0x143   :  { %v285_v31 = vpack.c.bf16 %v265_v29, %v264_v28  ;;  %v383_v35 = vadd.f32 %v1653_v40, %v382_v30  ;;  %v519_v29 = vpop.permute.xlu0 %518  ;;  %v522_v30 = vpop.permute.xlu1 %521 }
 0x144   :  { %995 = vmatpush.bf16.msra.mxu3 %v1295_v27  ;;  %vm589_vm13 = vcmp.eq.s32.totalorder %v1648_v38, %v519_v29  ;;  %vm590_vm14 = vcmp.eq.s32.totalorder %v1648_v38, %v522_v30 }
 0x145   :  { %421 = vmatmul.bf16.gmra.mxu1 %v285_v31  ;;  %v679_v42 = vadd.f32 %v1181_v39, %v383_v35  ;;  %v1187_v35 = vsel %vm589_vm13, 1.0, %v1307_v44 }
 0x146   :  { %v222_v32 = vpop.f32.mrf.mxu0 }
 0x147   :  { %v223_v43 = vadd.f32 %v1533_v0, %v222_v32 }
 0x148   :  { %996 = vmatpush.bf16.msra.mxu3 %v1294_v33 }
 0x149   :  { %v266_v49 = vmax.f32 %v223_v43, 0.0 }
 0x14a   :  { %v384_v36 = vpop.f32.mrf.mxu1 }
 0x14b   :  { %v385_v37 = vadd.f32 %v1653_v40, %v384_v36  ;;  %v1188_v36 = vsel %vm590_vm14, 1.0, %v1307_v44 }
 0x14d   :  { %v680_v45 = vadd.f32 %v1182_v41, %v385_v37 }
 0x14e   :  { %v224_v46 = vpop.f32.mrf.mxu0 }
 0x14f   :  { %v225_v47 = vadd.f32 %v1533_v0, %v224_v46  ;;  %v708_v48 = vpack.c.bf16 %v680_v45, %v679_v42  ;;  %v1293_v42 = vld [vmem:[%s1999_s8 + $0x20] sm:$0xff] }
 0x150   :  { %997 = vmatpush.bf16.msra.mxu3 %v1293_v42 }
 0x151   :  { %v267_v50 = vmax.f32 %v225_v47, 0.0  ;;  %812 = vmatmul.bf16.gmra.mxu2 %v708_v48 }
 0x152   :  { %v387_v51 = vpop.f32.mrf.mxu1 }
 0x153   :  { %v286_v52 = vpack.c.bf16 %v267_v50, %v266_v49  ;;  %v388_v56 = vadd.f32 %v1653_v40, %v387_v51  ;;  %v1292_v50 = vld [vmem:[%s1999_s8 + $0x18] sm:$0xff] }
 0x154   :  { %998 = vmatpush.bf16.msra.mxu3 %v1292_v50 }
 0x155   :  { %426 = vmatmul.bf16.gmra.mxu1 %v286_v52  ;;  %v681_v61 = vadd.f32 %v1183_v60, %v388_v56  ;;  %v1291_v52 = vld [vmem:[%s1999_s8 + $0x10] sm:$0xff]  ;;  %v1290_v56 = vld [vmem:[%s1999_s8 + $0x8] sm:$0xff] }
 0x156   :  { %v227_v53 = vpop.f32.mrf.mxu0 }
 0x157   :  { %v228_v62 = vadd.f32 %v1533_v0, %v227_v53  ;;  %v528_v53 = vpop.permute.xlu0 %527 }
 0x158   :  { %999 = vmatpush.bf16.msra.mxu3 %v1291_v52  ;;  %vm592_vm15 = vcmp.eq.s32.totalorder %v1648_v38, %v528_v53 }
 0x159   :  { %v268_v4 = vmax.f32 %v228_v62, 0.0  ;;  %v1289_v62 = vld [vmem:[%s1999_s8] sm:$0xff] }
 0x15a   :  { %v389_v57 = vpop.f32.mrf.mxu1 }
 0x15b   :  { %v390_v58 = vadd.f32 %v1653_v40, %v389_v57 }
 0x15c   :  { %1000 = vmatpush.bf16.msra.mxu3 %v1290_v56 }
 0x15d   :  { %v682_v63 = vadd.f32 %v1184_v59, %v390_v58  ;;  %v1190_v58 = vsel %vm592_vm15, 1.0, %v1307_v44  ;;  %v1189_v59 = vsel %vm591_vm1, 1.0, %v1307_v44 }
 0x15e   :  { %v229_v1 = vpop.f32.mrf.mxu0 }
 0x15f   :  { %v230_v2 = vadd.f32 %v1533_v0, %v229_v1  ;;  %v709_v3 = vpack.c.bf16 %v682_v63, %v681_v61 }
 0x160   :  { %1001 = vmatpush.bf16.msra.mxu3 %v1289_v62 }
 0x161   :  { %v269_v5 = vmax.f32 %v230_v2, 0.0  ;;  %817 = vmatmul.bf16.gmra.mxu2 %v709_v3  ;;  %v531_v2 = vpop.permute.xlu1 %530  ;;  %v534_v3 = vpop.permute.xlu2 %533 }
 0x162   :  { %v392_v6 = vpop.f32.mrf.mxu1  ;;  %vm593_vm2 = vcmp.eq.s32.totalorder %v1648_v38, %v531_v2  ;;  %vm594_vm3 = vcmp.eq.s32.totalorder %v1648_v38, %v534_v3 }
 0x163   :  { %v287_v7 = vpack.c.bf16 %v269_v5, %v268_v4  ;;  %v393_v11 = vadd.f32 %v1653_v40, %v392_v6 }
 0x165   :  { %431 = vmatmul.bf16.gmra.mxu1 %v287_v7  ;;  %v683_v16 = vadd.f32 %v1185_v14, %v393_v11  ;;  %v1191_v7 = vsel %vm593_vm2, 1.0, %v1307_v44  ;;  %v1750_v14 = vld [vmem:[%s1998_s7] ss:$0 sm:$0xff] }
 0x166   :  { %v232_v8 = vpop.f32.mrf.mxu0 }
 0x167   :  { %v233_v17 = vadd.f32 %v1533_v0, %v232_v8  ;;  %v1192_v8 = vsel %vm594_vm3, 1.0, %v1307_v44 }
 0x169   :  { %v270_v22 = vmax.f32 %v233_v17, 0.0 }
 0x16a   :  { %v394_v12 = vpop.f32.mrf.mxu1 }
 0x16b   :  { %v395_v13 = vadd.f32 %v1653_v40, %v394_v12 }
 0x16d   :  { %v684_v18 = vadd.f32 %v1186_v15, %v395_v13  ;;  %v537_v15 = vpop.permute.xlu0 %536 }
 0x16e   :  { %v234_v19 = vpop.f32.mrf.mxu0  ;;  %vm595_vm4 = vcmp.eq.s32.totalorder %v1648_v38, %v537_v15 }
 0x16f   :  { %v235_v20 = vadd.f32 %v1533_v0, %v234_v19  ;;  %v710_v21 = vpack.c.bf16 %v684_v18, %v683_v16  ;;  %v540_v16 = vpop.permute.xlu1 %539 }
 0x170   :  { %vm596_vm5 = vcmp.eq.s32.totalorder %v1648_v38, %v540_v16 }
 0x171   :  { %v271_v23 = vmax.f32 %v235_v20, 0.0  ;;  %822 = vmatmul.bf16.gmra.mxu2 %v710_v21  ;;  %v1193_v21 = vsel %vm595_vm4, 1.0, %v1307_v44 }
 0x172   :  { %v397_v24 = vpop.f32.mrf.mxu1 }
 0x173   :  { %v288_v26 = vpack.c.bf16 %v271_v23, %v270_v22  ;;  %v398_v31 = vadd.f32 %v1653_v40, %v397_v24  ;;  %v1194_v22 = vsel %vm596_vm5, 1.0, %v1307_v44 }
 0x175   :  { %436 = vmatmul.bf16.gmra.mxu1 %v288_v26  ;;  %v685_v37 = vadd.f32 %v1187_v35, %v398_v31  ;;  %v546_v33 = vpop.permute.xlu0 %545 }
 0x176   :  { %v237_v28 = vpop.f32.mrf.mxu0  ;;  %vm598_vm6 = vcmp.eq.s32.totalorder %v1648_v38, %v546_v33 }
 0x177   :  { %v238_v39 = vadd.f32 %v1533_v0, %v237_v28  ;;  %v549_v54 = vpop.permute.xlu1 %548 }
 0x178   :  { %vm599_vm8 = vcmp.eq.s32.totalorder %v1648_v38, %v549_v54 }
 0x179   :  { %v272_v47 = vmax.f32 %v238_v39, 0.0 }
 0x17a   :  { %v399_v32 = vpop.f32.mrf.mxu1 }
 0x17b   :  { %v400_v34 = vadd.f32 %v1653_v40, %v399_v32 }
 0x17d   :  { %v686_v41 = vadd.f32 %v1188_v36, %v400_v34  ;;  %v543_v34 = vpop.permute.xlu2 %542 }
 0x17e   :  { %v239_v43 = vpop.f32.mrf.mxu0  ;;  %vm597_vm7 = vcmp.eq.s32.totalorder %v1648_v38, %v543_v34 }
 0x17f   :  { %v240_v45 = vadd.f32 %v1533_v0, %v239_v43  ;;  %v711_v46 = vpack.c.bf16 %v686_v41, %v685_v37  ;;  %v1196_v41 = vsel %vm598_vm6, 1.0, %v1307_v44  ;;  %v1195_v42 = vsel %vm597_vm7, 1.0, %v1307_v44 }
 0x181   :  { %v273_v48 = vmax.f32 %v240_v45, 0.0  ;;  %827 = vmatmul.bf16.gmra.mxu2 %v711_v46 }
 0x182   :  { %v402_v49 = vpop.f32.mrf.mxu1 }
 0x183   :  { %v289_v51 = vpack.c.bf16 %v273_v48, %v272_v47  ;;  %v403_v0 = vadd.f32 %v1653_v40, %v402_v49 }
 0x185   :  { %441 = vmatmul.bf16.gmra.mxu1 %v289_v51  ;;  %v687_v60 = vadd.f32 %v1189_v59, %v403_v0  ;;  %v552_v0 = vpop.permute.xlu2 %551  ;;  %v1197_v59 = vsel %vm599_vm8, 1.0, %v1307_v44 }
 0x186   :  { %vm600_vm9 = vcmp.eq.s32.totalorder %v1648_v38, %v552_v0 }
 0x18a   :  { %v404_v55 = vpop.f32.mrf.mxu1 }
 0x18b   :  { %v405_v57 = vadd.f32 %v1653_v40, %v404_v55 }
 0x18d   :  { %v688_v61 = vadd.f32 %v1190_v58, %v405_v57 }
 0x18f   :  { %v712_v63 = vpack.c.bf16 %v688_v61, %v687_v60  ;;  %v1198_v60 = vsel %vm600_vm9, 1.0, %v1307_v44 }
 0x191   :  { %832 = vmatmul.bf16.gmra.mxu2 %v712_v63 }
 0x192   :  { %v407_v1 = vpop.f32.mrf.mxu1 }
 0x193   :  { %v408_v4 = vadd.f32 %v1653_v40, %v407_v1 }
 0x195   :  { %v689_v9 = vadd.f32 %v1191_v7, %v408_v4 }
 0x19a   :  { %v409_v5 = vpop.f32.mrf.mxu1 }
 0x19b   :  { %v410_v6 = vadd.f32 %v1653_v40, %v409_v5 }
 0x19d   :  { %v690_v10 = vadd.f32 %v1192_v8, %v410_v6  ;;  %v555_v8 = vpop.permute.xlu0 %554 }
 0x19e   :  { %vm601_vm10 = vcmp.eq.s32.totalorder %v1648_v38, %v555_v8 }
 0x19f   :  { %v713_v11 = vpack.c.bf16 %v690_v10, %v689_v9  ;;  %v558_v9 = vpop.permute.xlu1 %557  ;;  %v1199_v15 = vsel %vm601_vm10, 1.0, %v1307_v44 }
 0x1a0   :  { %vm602_vm11 = vcmp.eq.s32.totalorder %v1648_v38, %v558_v9 }
 0x1a1   :  { %837 = vmatmul.bf16.gmra.mxu2 %v713_v11  ;;  %v1200_v16 = vsel %vm602_vm11, 1.0, %v1307_v44 }
 0x1a2   :  { %v412_v12 = vpop.f32.mrf.mxu1 }
 0x1a3   :  { %v413_v17 = vadd.f32 %v1653_v40, %v412_v12 }
 0x1a4   :  { %v798_v13 = vpop.f32.mrf.mxu2 }
 0x1a5   :  { %v799_v19 = vadd.f32 %v1750_v14, %v798_v13  ;;  %v691_v24 = vadd.f32 %v1193_v21, %v413_v17 }
 0x1a7   :  { %v878_v27 = vmax.f32 %v799_v19, 0.0 }
 0x1aa   :  { %v414_v18 = vpop.f32.mrf.mxu1 }
 0x1ab   :  { %v415_v20 = vadd.f32 %v1653_v40, %v414_v18 }
 0x1ac   :  { %v800_v23 = vpop.f32.mrf.mxu2 }
 0x1ad   :  { %v692_v25 = vadd.f32 %v1194_v22, %v415_v20  ;;  %v801_v26 = vadd.f32 %v1750_v14, %v800_v23 }
 0x1af   :  { %v879_v28 = vmax.f32 %v801_v26, 0.0  ;;  %v714_v29 = vpack.c.bf16 %v692_v25, %v691_v24 }
 0x1b1   :  { %842 = vmatmul.bf16.gmra.mxu2 %v714_v29  ;;  %v910_v30 = vpack.c.bf16 %v879_v28, %v878_v27  ;;  %v564_v27 = vpop.permute.xlu0 %563  ;;  %v561_v28 = vpop.permute.xlu2 %560 }
 0x1b2   :  { %v417_v31 = vpop.f32.mrf.mxu1  ;;  %vm604_vm12 = vcmp.eq.s32.totalorder %v1648_v38, %v564_v27  ;;  %vm603_vm13 = vcmp.eq.s32.totalorder %v1648_v38, %v561_v28 }
 0x1b3   :  { %1002 = vmatmul.bf16.vlgmr.msra.gmra.mxu3 %v910_v30  ;;  %v418_v35 = vadd.f32 %v1653_v40, %v417_v31  ;;  %v1202_v33 = vsel %vm604_vm12, 1.0, %v1307_v44  ;;  %v1201_v34 = vsel %vm603_vm13, 1.0, %v1307_v44 }
 0x1b4   :  { %v803_v32 = vpop.f32.mrf.mxu2 }
 0x1b5   :  { %v804_v37 = vadd.f32 %v1750_v14, %v803_v32  ;;  %v693_v45 = vadd.f32 %v1195_v42, %v418_v35 }
 0x1b7   :  { %v880_v48 = vmax.f32 %v804_v37, 0.0 }
 0x1ba   :  { %v419_v36 = vpop.f32.mrf.mxu1 }
 0x1bb   :  { %v420_v39 = vadd.f32 %v1653_v40, %v419_v36 }
 0x1bc   :  { %v805_v43 = vpop.f32.mrf.mxu2 }
 0x1bd   :  { %v694_v46 = vadd.f32 %v1196_v41, %v420_v39  ;;  %v806_v47 = vadd.f32 %v1750_v14, %v805_v43 }
 0x1bf   :  { %v881_v49 = vmax.f32 %v806_v47, 0.0  ;;  %v715_v50 = vpack.c.bf16 %v694_v46, %v693_v45 }
 0x1c1   :  { %847 = vmatmul.bf16.gmra.mxu2 %v715_v50  ;;  %v911_v51 = vpack.c.bf16 %v881_v49, %v880_v48  ;;  %v570_v48 = vpop.permute.xlu2 %569  ;;  %v567_v49 = vpop.permute.xlu1 %566 }
 0x1c2   :  { %v422_v52 = vpop.f32.mrf.mxu1  ;;  %vm605_vm14 = vcmp.eq.s32.totalorder %v1648_v38, %v567_v49  ;;  %vm606_vm15 = vcmp.eq.s32.totalorder %v1648_v38, %v570_v48 }
 0x1c3   :  { %1007 = vmatmul.bf16.gmra.mxu3 %v911_v51  ;;  %v423_v55 = vadd.f32 %v1653_v40, %v422_v52  ;;  %v1203_v54 = vsel %vm605_vm14, 1.0, %v1307_v44  ;;  %v1204_v0 = vsel %vm606_vm15, 1.0, %v1307_v44 }
 0x1c4   :  { %v808_v53 = vpop.f32.mrf.mxu2 }
 0x1c5   :  { %v809_v57 = vadd.f32 %v1750_v14, %v808_v53  ;;  %v695_v62 = vadd.f32 %v1197_v59, %v423_v55 }
 0x1c7   :  { %v882_v2 = vmax.f32 %v809_v57, 0.0 }
 0x1ca   :  { %v424_v56 = vpop.f32.mrf.mxu1 }
 0x1cb   :  { %v425_v58 = vadd.f32 %v1653_v40, %v424_v56 }
 0x1cc   :  { %v810_v61 = vpop.f32.mrf.mxu2 }
 0x1cd   :  { %v696_v63 = vadd.f32 %v1198_v60, %v425_v58  ;;  %v811_v1 = vadd.f32 %v1750_v14, %v810_v61 }
 0x1cf   :  { %v883_v3 = vmax.f32 %v811_v1, 0.0  ;;  %v716_v4 = vpack.c.bf16 %v696_v63, %v695_v62 }
 0x1d1   :  { %852 = vmatmul.bf16.gmra.mxu2 %v716_v4  ;;  %v912_v5 = vpack.c.bf16 %v883_v3, %v882_v2  ;;  %v573_v2 = vpop.permute.xlu0 %572  ;;  %v576_v3 = vpop.permute.xlu1 %575 }
 0x1d2   :  { %v427_v6 = vpop.f32.mrf.mxu1  ;;  %vm607_vm1 = vcmp.eq.s32.totalorder %v1648_v38, %v573_v2  ;;  %vm608_vm2 = vcmp.eq.s32.totalorder %v1648_v38, %v576_v3 }
 0x1d3   :  { %1012 = vmatmul.bf16.gmra.mxu3 %v912_v5  ;;  %v428_v10 = vadd.f32 %v1653_v40, %v427_v6  ;;  %v1205_v8 = vsel %vm607_vm1, 1.0, %v1307_v44  ;;  %v1206_v9 = vsel %vm608_vm2, 1.0, %v1307_v44 }
 0x1d4   :  { %v813_v7 = vpop.f32.mrf.mxu2 }
 0x1d5   :  { %v814_v12 = vadd.f32 %v1750_v14, %v813_v7  ;;  %v697_v18 = vadd.f32 %v1199_v15, %v428_v10 }
 0x1d7   :  { %v884_v21 = vmax.f32 %v814_v12, 0.0 }
 0x1da   :  { %v429_v11 = vpop.f32.mrf.mxu1 }
 0x1db   :  { %v430_v13 = vadd.f32 %v1653_v40, %v429_v11 }
 0x1dc   :  { %v815_v17 = vpop.f32.mrf.mxu2 }
 0x1dd   :  { %v698_v19 = vadd.f32 %v1200_v16, %v430_v13  ;;  %v816_v20 = vadd.f32 %v1750_v14, %v815_v17 }
 0x1df   :  { %v885_v22 = vmax.f32 %v816_v20, 0.0  ;;  %v717_v23 = vpack.c.bf16 %v698_v19, %v697_v18 }
 0x1e1   :  { %857 = vmatmul.bf16.gmra.mxu2 %v717_v23  ;;  %v913_v24 = vpack.c.bf16 %v885_v22, %v884_v21 }
 0x1e2   :  { %v432_v25 = vpop.f32.mrf.mxu1 }
 0x1e3   :  { %1017 = vmatmul.bf16.gmra.mxu3 %v913_v24  ;;  %v433_v29 = vadd.f32 %v1653_v40, %v432_v25 }
 0x1e4   :  { %v818_v26 = vpop.f32.mrf.mxu2 }
 0x1e5   :  { %v819_v31 = vadd.f32 %v1750_v14, %v818_v26  ;;  %v699_v36 = vadd.f32 %v1201_v34, %v433_v29 }
 0x1e7   :  { %v886_v41 = vmax.f32 %v819_v31, 0.0 }
 0x1ea   :  { %v434_v30 = vpop.f32.mrf.mxu1 }
 0x1eb   :  { %v435_v32 = vadd.f32 %v1653_v40, %v434_v30  ;;  %v1815_v30 = vld [vmem:[%s2000_s9] ss:$0 sm:$0xff] }
 0x1ec   :  { %v820_v35 = vpop.f32.mrf.mxu2 }
 0x1ed   :  { %v700_v37 = vadd.f32 %v1202_v33, %v435_v32  ;;  %v821_v39 = vadd.f32 %v1750_v14, %v820_v35 }
 0x1ef   :  { %v887_v42 = vmax.f32 %v821_v39, 0.0  ;;  %v718_v43 = vpack.c.bf16 %v700_v37, %v699_v36 }
 0x1f1   :  { %862 = vmatmul.bf16.gmra.mxu2 %v718_v43  ;;  %v914_v45 = vpack.c.bf16 %v887_v42, %v886_v41 }
 0x1f2   :  { %v437_v46 = vpop.f32.mrf.mxu1 }
 0x1f3   :  { %1022 = vmatmul.bf16.gmra.mxu3 %v914_v45  ;;  %v438_v50 = vadd.f32 %v1653_v40, %v437_v46 }
 0x1f4   :  { %v823_v47 = vpop.f32.mrf.mxu2 }
 0x1f5   :  { %v824_v52 = vadd.f32 %v1750_v14, %v823_v47  ;;  %v701_v56 = vadd.f32 %v1203_v54, %v438_v50 }
 0x1f7   :  { %v888_v59 = vmax.f32 %v824_v52, 0.0 }
 0x1fa   :  { %v439_v51 = vpop.f32.mrf.mxu1 }
 0x1fb   :  { %v440_v53 = vadd.f32 %v1653_v40, %v439_v51 }
 0x1fc   :  { %v825_v55 = vpop.f32.mrf.mxu2 }
 0x1fd   :  { %v702_v57 = vadd.f32 %v1204_v0, %v440_v53  ;;  %v826_v58 = vadd.f32 %v1750_v14, %v825_v55 }
 0x1ff   :  { %v889_v60 = vmax.f32 %v826_v58, 0.0  ;;  %v719_v61 = vpack.c.bf16 %v702_v57, %v701_v56 }
 0x201   :  { %867 = vmatmul.bf16.gmra.mxu2 %v719_v61  ;;  %v915_v62 = vpack.c.bf16 %v889_v60, %v888_v59 }
 0x202   :  { %v442_v63 = vpop.f32.mrf.mxu1 }
 0x203   :  { %1027 = vmatmul.bf16.gmra.mxu3 %v915_v62  ;;  %v443_v4 = vadd.f32 %v1653_v40, %v442_v63 }
 0x204   :  { %v828_v1 = vpop.f32.mrf.mxu2 }
 0x205   :  { %v829_v6 = vadd.f32 %v1750_v14, %v828_v1  ;;  %v703_v11 = vadd.f32 %v1205_v8, %v443_v4 }
 0x207   :  { %v890_v15 = vmax.f32 %v829_v6, 0.0 }
 0x20a   :  { %v444_v5 = vpop.f32.mrf.mxu1 }
 0x20b   :  { %v445_v7 = vadd.f32 %v1653_v40, %v444_v5 }
 0x20c   :  { %v830_v10 = vpop.f32.mrf.mxu2 }
 0x20d   :  { %v704_v12 = vadd.f32 %v1206_v9, %v445_v7  ;;  %v831_v13 = vadd.f32 %v1750_v14, %v830_v10 }
 0x20f   :  { %v891_v16 = vmax.f32 %v831_v13, 0.0  ;;  %v720_v17 = vpack.c.bf16 %v704_v12, %v703_v11 }
 0x211   :  { %872 = vmatmul.bf16.gmra.mxu2 %v720_v17  ;;  %v916_v38 = vpack.c.bf16 %v891_v16, %v890_v15 }
 0x213   :  { %1032 = vmatmul.bf16.gmra.mxu3 %v916_v38 }
 0x214   :  { %v833_v18 = vpop.f32.mrf.mxu2 }
 0x215   :  { %v834_v19 = vadd.f32 %v1750_v14, %v833_v18 }
 0x217   :  { %v892_v21 = vmax.f32 %v834_v19, 0.0 }
 0x21c   :  { %v835_v20 = vpop.f32.mrf.mxu2 }
 0x21d   :  { %v836_v40 = vadd.f32 %v1750_v14, %v835_v20 }
 0x21f   :  { %v893_v22 = vmax.f32 %v836_v40, 0.0 }
 0x221   :  { %v917_v44 = vpack.c.bf16 %v893_v22, %v892_v21 }
 0x223   :  { %1037 = vmatmul.bf16.gmra.mxu3 %v917_v44 }
 0x224   :  { %v838_v23 = vpop.f32.mrf.mxu2 }
 0x225   :  { %v839_v24 = vadd.f32 %v1750_v14, %v838_v23 }
 0x227   :  { %v894_v27 = vmax.f32 %v839_v24, 0.0 }
 0x22c   :  { %v840_v25 = vpop.f32.mrf.mxu2 }
 0x22d   :  { %v841_v26 = vadd.f32 %v1750_v14, %v840_v25 }
 0x22f   :  { %v895_v28 = vmax.f32 %v841_v26, 0.0 }
 0x231   :  { %v918_v29 = vpack.c.bf16 %v895_v28, %v894_v27 }
 0x233   :  { %1042 = vmatmul.bf16.gmra.mxu3 %v918_v29 }
 0x234   :  { %v843_v31 = vpop.f32.mrf.mxu2 }
 0x235   :  { %v844_v34 = vadd.f32 %v1750_v14, %v843_v31 }
 0x236   :  { %v1003_v32 = vpop.f32.mrf.mxu3 }
 0x237   :  { %v1004_v33 = vadd.f32 %v1815_v30, %v1003_v32  ;;  %v896_v39 = vmax.f32 %v844_v34, 0.0 }
 0x239   :  { %1083 = vst.msk [vmem:[%s2001_s10] sm:$0xff] %vm104_vm0, %v1004_v33 }
 0x23c   :  { %v845_v35 = vpop.f32.mrf.mxu2 }
 0x23d   :  { %v846_v36 = vadd.f32 %v1750_v14, %v845_v35 }
 0x23e   :  { %v1005_v37 = vpop.f32.mrf.mxu3 }
 0x23f   :  { %v897_v41 = vmax.f32 %v846_v36, 0.0  ;;  %v1006_v42 = vadd.f32 %v1815_v30, %v1005_v37 }
 0x241   :  { %1084 = vst.msk [vmem:[%s2001_s10 + $0x8] sm:$0xff] %vm104_vm0, %v1006_v42  ;;  %v919_v43 = vpack.c.bf16 %v897_v41, %v896_v39 }
 0x243   :  { %1047 = vmatmul.bf16.gmra.mxu3 %v919_v43 }
 0x244   :  { %v848_v45 = vpop.f32.mrf.mxu2 }
 0x245   :  { %v849_v48 = vadd.f32 %v1750_v14, %v848_v45 }
 0x246   :  { %v1008_v46 = vpop.f32.mrf.mxu3 }
 0x247   :  { %v1009_v47 = vadd.f32 %v1815_v30, %v1008_v46  ;;  %v898_v52 = vmax.f32 %v849_v48, 0.0 }
 0x249   :  { %1085 = vst.msk [vmem:[%s2001_s10 + $0x10] sm:$0xff] %vm104_vm0, %v1009_v47 }
 0x24c   :  { %v850_v49 = vpop.f32.mrf.mxu2 }
 0x24d   :  { %v851_v50 = vadd.f32 %v1750_v14, %v850_v49 }
 0x24e   :  { %v1010_v51 = vpop.f32.mrf.mxu3 }
 0x24f   :  { %v899_v53 = vmax.f32 %v851_v50, 0.0  ;;  %v1011_v54 = vadd.f32 %v1815_v30, %v1010_v51 }
 0x251   :  { %1086 = vst.msk [vmem:[%s2001_s10 + $0x18] sm:$0xff] %vm104_vm0, %v1011_v54  ;;  %v920_v0 = vpack.c.bf16 %v899_v53, %v898_v52 }
 0x253   :  { %1052 = vmatmul.bf16.gmra.mxu3 %v920_v0 }
 0x254   :  { %v853_v55 = vpop.f32.mrf.mxu2 }
 0x255   :  { %v854_v58 = vadd.f32 %v1750_v14, %v853_v55 }
 0x256   :  { %v1013_v56 = vpop.f32.mrf.mxu3 }
 0x257   :  { %v1014_v57 = vadd.f32 %v1815_v30, %v1013_v56  ;;  %v900_v62 = vmax.f32 %v854_v58, 0.0 }
 0x259   :  { %1087 = vst.msk [vmem:[%s2001_s10 + $0x20] sm:$0xff] %vm104_vm0, %v1014_v57 }
 0x25c   :  { %v855_v59 = vpop.f32.mrf.mxu2 }
 0x25d   :  { %v856_v60 = vadd.f32 %v1750_v14, %v855_v59 }
 0x25e   :  { %v1015_v61 = vpop.f32.mrf.mxu3 }
 0x25f   :  { %v901_v63 = vmax.f32 %v856_v60, 0.0  ;;  %v1016_v1 = vadd.f32 %v1815_v30, %v1015_v61 }
 0x261   :  { %1088 = vst.msk [vmem:[%s2001_s10 + $0x28] sm:$0xff] %vm104_vm0, %v1016_v1  ;;  %v921_v2 = vpack.c.bf16 %v901_v63, %v900_v62 }
 0x263   :  { %1057 = vmatmul.bf16.gmra.mxu3 %v921_v2 }
 0x264   :  { %v858_v3 = vpop.f32.mrf.mxu2 }
 0x265   :  { %v859_v6 = vadd.f32 %v1750_v14, %v858_v3 }
 0x266   :  { %v1018_v4 = vpop.f32.mrf.mxu3 }
 0x267   :  { %v1019_v5 = vadd.f32 %v1815_v30, %v1018_v4  ;;  %v902_v10 = vmax.f32 %v859_v6, 0.0 }
 0x269   :  { %1089 = vst.msk [vmem:[%s2001_s10 + $0x30] sm:$0xff] %vm104_vm0, %v1019_v5 }
 0x26c   :  { %v860_v7 = vpop.f32.mrf.mxu2 }
 0x26d   :  { %v861_v8 = vadd.f32 %v1750_v14, %v860_v7 }
 0x26e   :  { %v1020_v9 = vpop.f32.mrf.mxu3 }
 0x26f   :  { %v903_v11 = vmax.f32 %v861_v8, 0.0  ;;  %v1021_v12 = vadd.f32 %v1815_v30, %v1020_v9 }
 0x271   :  { %v922_v13 = vpack.c.bf16 %v903_v11, %v902_v10  ;;  %1090 = vst.msk [vmem:[%s2001_s10 + $0x38] sm:$0xff] %vm104_vm0, %v1021_v12 }
 0x273   :  { %1062 = vmatmul.bf16.gmra.mxu3 %v922_v13 }
 0x274   :  { %v863_v15 = vpop.f32.mrf.mxu2 }
 0x275   :  { %v864_v38 = vadd.f32 %v1750_v14, %v863_v15 }
 0x276   :  { %v1023_v16 = vpop.f32.mrf.mxu3 }
 0x277   :  { %v1024_v17 = vadd.f32 %v1815_v30, %v1023_v16  ;;  %v904_v40 = vmax.f32 %v864_v38, 0.0 }
 0x279   :  { %1091 = vst.msk [vmem:[%s2001_s10 + $0x40] sm:$0xff] %vm104_vm0, %v1024_v17 }
 0x27c   :  { %v865_v18 = vpop.f32.mrf.mxu2 }
 0x27d   :  { %v866_v19 = vadd.f32 %v1750_v14, %v865_v18 }
 0x27e   :  { %v1025_v20 = vpop.f32.mrf.mxu3 }
 0x27f   :  { %v905_v21 = vmax.f32 %v866_v19, 0.0  ;;  %v1026_v22 = vadd.f32 %v1815_v30, %v1025_v20 }
 0x281   :  { %v923_v44 = vpack.c.bf16 %v905_v21, %v904_v40  ;;  %1092 = vst.msk [vmem:[%s2001_s10 + $0x48] sm:$0xff] %vm104_vm0, %v1026_v22 }
 0x283   :  { %1067 = vmatmul.bf16.gmra.mxu3 %v923_v44 }
 0x284   :  { %v868_v23 = vpop.f32.mrf.mxu2 }
 0x285   :  { %v869_v26 = vadd.f32 %v1750_v14, %v868_v23 }
 0x286   :  { %v1028_v24 = vpop.f32.mrf.mxu3 }
 0x287   :  { %v1029_v25 = vadd.f32 %v1815_v30, %v1028_v24  ;;  %v906_v31 = vmax.f32 %v869_v26, 0.0 }
 0x289   :  { %1093 = vst.msk [vmem:[%s2001_s10 + $0x50] sm:$0xff] %vm104_vm0, %v1029_v25 }
 0x28c   :  { %v870_v27 = vpop.f32.mrf.mxu2 }
 0x28d   :  { %v871_v28 = vadd.f32 %v1750_v14, %v870_v27 }
 0x28e   :  { %v1030_v29 = vpop.f32.mrf.mxu3 }
 0x28f   :  { %v907_v32 = vmax.f32 %v871_v28, 0.0  ;;  %v1031_v33 = vadd.f32 %v1815_v30, %v1030_v29 }
 0x291   :  { %v924_v34 = vpack.c.bf16 %v907_v32, %v906_v31  ;;  %1094 = vst.msk [vmem:[%s2001_s10 + $0x58] sm:$0xff] %vm104_vm0, %v1031_v33 }
 0x293   :  { %1072 = vmatmul.bf16.gmra.mxu3 %v924_v34 }
 0x294   :  { %v873_v35 = vpop.f32.mrf.mxu2 }
 0x295   :  { %v874_v39 = vadd.f32 %v1750_v14, %v873_v35 }
 0x296   :  { %v1033_v36 = vpop.f32.mrf.mxu3 }
 0x297   :  { %v1034_v37 = vadd.f32 %v1815_v30, %v1033_v36  ;;  %v908_v45 = vmax.f32 %v874_v39, 0.0 }
 0x299   :  { %1095 = vst.msk [vmem:[%s2001_s10 + $0x60] sm:$0xff] %vm104_vm0, %v1034_v37 }
 0x29c   :  { %v875_v41 = vpop.f32.mrf.mxu2 }
 0x29d   :  { %v876_v42 = vadd.f32 %v1750_v14, %v875_v41 }
 0x29e   :  { %v1035_v43 = vpop.f32.mrf.mxu3 }
 0x29f   :  { %v909_v46 = vmax.f32 %v876_v42, 0.0  ;;  %v1036_v47 = vadd.f32 %v1815_v30, %v1035_v43 }
 0x2a1   :  { %v925_v48 = vpack.c.bf16 %v909_v46, %v908_v45  ;;  %1096 = vst.msk [vmem:[%s2001_s10 + $0x68] sm:$0xff] %vm104_vm0, %v1036_v47 }
 0x2a3   :  { %1077 = vmatmul.bf16.gmra.mxu3 %v925_v48 }
 0x2a6   :  { %v1038_v49 = vpop.f32.mrf.mxu3 }
 0x2a7   :  { %v1039_v50 = vadd.f32 %v1815_v30, %v1038_v49 }
 0x2a9   :  { %1097 = vst.msk [vmem:[%s2001_s10 + $0x70] sm:$0xff] %vm104_vm0, %v1039_v50 }
 0x2ae   :  { %v1040_v14 = vpop.f32.mrf.mxu3 }
 0x2af   :  { %v1041_v51 = vadd.f32 %v1815_v30, %v1040_v14 }
 0x2b1   :  { %1098 = vst.msk [vmem:[%s2001_s10 + $0x78] sm:$0xff] %vm104_vm0, %v1041_v51 }
 0x2b6   :  { %v1043_v52 = vpop.f32.mrf.mxu3 }
 0x2b7   :  { %v1044_v53 = vadd.f32 %v1815_v30, %v1043_v52 }
 0x2b9   :  { %1099 = vst.msk [vmem:[%s2001_s10 + $0x80] sm:$0xff] %vm104_vm0, %v1044_v53 }
 0x2be   :  { %v1045_v54 = vpop.f32.mrf.mxu3 }
 0x2bf   :  { %v1046_v0 = vadd.f32 %v1815_v30, %v1045_v54 }
 0x2c1   :  { %1100 = vst.msk [vmem:[%s2001_s10 + $0x88] sm:$0xff] %vm104_vm0, %v1046_v0 }
 0x2c6   :  { %v1048_v55 = vpop.f32.mrf.mxu3 }
 0x2c7   :  { %v1049_v56 = vadd.f32 %v1815_v30, %v1048_v55 }
 0x2c9   :  { %1101 = vst.msk [vmem:[%s2001_s10 + $0x90] sm:$0xff] %vm104_vm0, %v1049_v56 }
 0x2ce   :  { %v1050_v57 = vpop.f32.mrf.mxu3 }
 0x2cf   :  { %v1051_v58 = vadd.f32 %v1815_v30, %v1050_v57 }
 0x2d1   :  { %1102 = vst.msk [vmem:[%s2001_s10 + $0x98] sm:$0xff] %vm104_vm0, %v1051_v58 }
 0x2d6   :  { %v1053_v59 = vpop.f32.mrf.mxu3 }
 0x2d7   :  { %v1054_v60 = vadd.f32 %v1815_v30, %v1053_v59 }
 0x2d9   :  { %1103 = vst.msk [vmem:[%s2001_s10 + $0xa0] sm:$0xff] %vm104_vm0, %v1054_v60 }
 0x2de   :  { %v1055_v61 = vpop.f32.mrf.mxu3 }
 0x2df   :  { %v1056_v62 = vadd.f32 %v1815_v30, %v1055_v61 }
 0x2e1   :  { %1104 = vst.msk [vmem:[%s2001_s10 + $0xa8] sm:$0xff] %vm104_vm0, %v1056_v62 }
 0x2e6   :  { %v1058_v63 = vpop.f32.mrf.mxu3 }
 0x2e7   :  { %v1059_v1 = vadd.f32 %v1815_v30, %v1058_v63 }
 0x2e9   :  { %1105 = vst.msk [vmem:[%s2001_s10 + $0xb0] sm:$0xff] %vm104_vm0, %v1059_v1 }
 0x2ee   :  { %v1060_v2 = vpop.f32.mrf.mxu3 }
 0x2ef   :  { %v1061_v3 = vadd.f32 %v1815_v30, %v1060_v2 }
 0x2f1   :  { %1106 = vst.msk [vmem:[%s2001_s10 + $0xb8] sm:$0xff] %vm104_vm0, %v1061_v3 }
 0x2f6   :  { %v1063_v4 = vpop.f32.mrf.mxu3 }
 0x2f7   :  { %v1064_v5 = vadd.f32 %v1815_v30, %v1063_v4 }
 0x2f9   :  { %1107 = vst.msk [vmem:[%s2001_s10 + $0xc0] sm:$0xff] %vm104_vm0, %v1064_v5 }
 0x2fe   :  { %v1065_v6 = vpop.f32.mrf.mxu3 }
 0x2ff   :  { %v1066_v7 = vadd.f32 %v1815_v30, %v1065_v6 }
 0x301   :  { %1108 = vst.msk [vmem:[%s2001_s10 + $0xc8] sm:$0xff] %vm104_vm0, %v1066_v7 }
 0x306   :  { %v1068_v8 = vpop.f32.mrf.mxu3 }
 0x307   :  { %v1069_v9 = vadd.f32 %v1815_v30, %v1068_v8 }
 0x309   :  { %1109 = vst.msk [vmem:[%s2001_s10 + $0xd0] sm:$0xff] %vm104_vm0, %v1069_v9 }
 0x30e   :  { %v1070_v10 = vpop.f32.mrf.mxu3 }
 0x30f   :  { %v1071_v11 = vadd.f32 %v1815_v30, %v1070_v10 }
 0x311   :  { %1110 = vst.msk [vmem:[%s2001_s10 + $0xd8] sm:$0xff] %vm104_vm0, %v1071_v11 }
 0x316   :  { %v1073_v12 = vpop.f32.mrf.mxu3 }
 0x317   :  { %v1074_v13 = vadd.f32 %v1815_v30, %v1073_v12 }
 0x319   :  { %1111 = vst.msk [vmem:[%s2001_s10 + $0xe0] sm:$0xff] %vm104_vm0, %v1074_v13 }
 0x31e   :  { %v1075_v15 = vpop.f32.mrf.mxu3 }
 0x31f   :  { %v1076_v16 = vadd.f32 %v1815_v30, %v1075_v15 }
 0x321   :  { %1112 = vst.msk [vmem:[%s2001_s10 + $0xe8] sm:$0xff] %vm104_vm0, %v1076_v16 }
 0x326   :  { %v1078_v17 = vpop.f32.mrf.mxu3 }
 0x327   :  { %v1079_v38 = vadd.f32 %v1815_v30, %v1078_v17 }
 0x329   :  { %1113 = vst.msk [vmem:[%s2001_s10 + $0xf0] sm:$0xff] %vm104_vm0, %v1079_v38 }
 0x32e   :  { %v1080_v18 = vpop.f32.mrf.mxu3 }
 0x32f   :  { %v1081_v19 = vadd.f32 %v1815_v30, %v1080_v18 }
 0x331   :  { %1114 = vst.msk [vmem:[%s2001_s10 + $0xf8] sm:$0xff] %vm104_vm0, %v1081_v19 }

</bundles_post_ra>
